<compile_context>
chip_gen: v7x
topology: tpu7x:2x2x1
jax: 0.10.0
libtpu: 0.0.40
codegen_flags: <defaults>
</compile_context>

<pallas_src>
import jax
import jax.numpy as jnp
from jax.experimental import pallas as pl
from jax.experimental.pallas import tpu as pltpu


def _round_up(x, m):
    return ((x + m - 1) // m) * m


def highway_kernel(x_row_ref, x_col_ref, wt_ref, b_ref, o_ref):
    # x_row_ref: (tm, Dp)   full row slab, feeds the MXU
    # x_col_ref: (tm, tn)   column slice of x matching this output tile
    # wt_ref:    (Dp, tn)   W.T column slab
    # b_ref:     (1, tn)
    # o_ref:     (tm, tn)
    y = jnp.dot(x_row_ref[...], wt_ref[...],
                preferred_element_type=jnp.float32) + b_ref[...]
    x_proj = jnp.maximum(y, 0.0)          # relu
    x_gate = jax.nn.sigmoid(y)            # sigmoid (same linear output)
    xc = x_col_ref[...].astype(jnp.float32)
    # g*p + (1-g)*x  ==  x + g*(p - x)
    o_ref[...] = (xc + x_gate * (x_proj - xc)).astype(o_ref.dtype)


def highway(x, weight, bias, *, tm=512, tn=256, matmul_dtype=None):
    """Highway forward.

    x:      (..., D_emb)
    weight: (D_emb, D_emb)  PyTorch nn.Linear layout (out, in)
    bias:   (D_emb,)
    tm/tn:  row / output-column tile sizes (tunable per TPU generation)
    matmul_dtype: optional dtype (e.g. jnp.bfloat16) for the MXU operands only.
    """
    orig_shape = x.shape
    D = orig_shape[-1]
    assert weight.shape == (D, D) and bias.shape == (D,)

    x2 = x.reshape(-1, D)
    N = x2.shape[0]

    # ---- lane-dense embedding padding (multiple of 128) --------------------
    Dp = _round_up(D, 128)
    wt = weight.T                                   # (in, out) -> x @ wt
    if Dp != D:
        x2 = jnp.pad(x2, ((0, 0), (0, Dp - D)))
        wt = jnp.pad(wt, ((0, Dp - D), (0, Dp - D)))
        bias = jnp.pad(bias, (0, Dp - D))
    b2 = bias.reshape(1, Dp).astype(jnp.float32)

    # ---- row tiling: big tiles, padded rows discarded afterwards -----------
    tm = _round_up(min(tm, _round_up(N, 8)), 8)
    Np = _round_up(N, tm)
    if Np != N:
        x2 = jnp.pad(x2, ((0, Np - N), (0, 0)))

    # ---- output-column tiling: keep the weight slab small in VMEM ----------
    if tn % 128 != 0 or Dp % tn != 0:
        tn = 256 if Dp % 256 == 0 else 128
    tn = min(tn, Dp)

    gm, gn = Np // tm, Dp // tn

    x_mm = x2.astype(matmul_dtype) if matmul_dtype is not None else x2
    wt_mm = wt.astype(matmul_dtype) if matmul_dtype is not None else wt

    out_padded = pl.pallas_call(
        highway_kernel,
        out_shape=jax.ShapeDtypeStruct((Np, Dp), x.dtype),
        grid_spec=pltpu.PrefetchScalarGridSpec(
            num_scalar_prefetch=0,
            grid=(gm, gn),
            in_specs=[
                # full row slab: index constant across inner (column) axis ->
                # fetched once per row tile, not per grid step.
                pl.BlockSpec((tm, Dp), lambda i, j: (i, 0)),
                # matching column slice of x for the highway combine.
                pl.BlockSpec((tm, tn), lambda i, j: (i, j)),
                # streaming weight column slab.
                pl.BlockSpec((Dp, tn), lambda i, j: (0, j)),
                pl.BlockSpec((1, tn), lambda i, j: (0, j)),
            ],
            out_specs=pl.BlockSpec((tm, tn), lambda i, j: (i, j)),
        ),
        compiler_params=pltpu.CompilerParams(
            dimension_semantics=("parallel", "parallel"),
            vmem_limit_bytes=48 * 1024 * 1024,
        ),
    )(x_mm, x2, wt_mm, b2)

    return out_padded[:N, :D].reshape(orig_shape)


def highway_ref(x, weight, bias):
    y = x @ weight.T + bias
    x_proj = jnp.maximum(y, 0.0)
    x_gate = jax.nn.sigmoid(y)
    return x_gate * x_proj + (1.0 - x_gate) * x


if __name__ == "__main__":
    # Small shapes consistent with the module: batch=2, seq=8, D_emb=32.
    batch, seq, D_emb = 2, 8, 32

    key = jax.random.PRNGKey(0)
    kx, kw, kb = jax.random.split(key, 3)

    # Deterministic init mimicking nn.Linear default: U(-1/sqrt(D), 1/sqrt(D)).
    bound = 1.0 / (D_emb ** 0.5)
    x = jax.random.normal(kx, (batch, seq, D_emb), dtype=jnp.float32)
    weight = jax.random.uniform(kw, (D_emb, D_emb), jnp.float32, -bound, bound)
    bias = jax.random.uniform(kb, (D_emb,), jnp.float32, -bound, bound)
    # NOTE: `gate_linear` params exist in __init__ but are unused in forward,
    # so they are not materialized here.

    out = highway(x, weight, bias)
    jax.block_until_ready(out)

    ref = highway_ref(x, weight, bias)
    assert out.shape == ref.shape
    assert jnp.allclose(out, ref, atol=1e-5, rtol=1e-5), "mismatch vs reference"

    print("KERNEL_OK")
</pallas_src>

<mosaic_0001>
module attributes {stable_mosaic.version = 11 : i64} {
  func.func @highway_kernel(%arg0: i32, %arg1: i32, %arg2: memref<16x128xf32, #tpu.memory_space<vmem>>, %arg3: memref<16x128xf32, #tpu.memory_space<vmem>>, %arg4: memref<128x128xf32, #tpu.memory_space<vmem>>, %arg5: memref<1x128xf32, #tpu.memory_space<vmem>>, %arg6: memref<16x128xf32, #tpu.memory_space<vmem>>) attributes {dimension_semantics = [#tpu.dimension_semantics<parallel>, #tpu.dimension_semantics<parallel>], iteration_bounds = array<i64: 1, 1>, scalar_prefetch = 0 : i64, scratch_operands = 0 : i64, tpu.core_type = #tpu.core_type<tc>, window_params = [{transform_indices = @transform_0, window_bounds = array<i64: 16, 128>}, {transform_indices = @transform_1, window_bounds = array<i64: 16, 128>}, {transform_indices = @transform_2, window_bounds = array<i64: 128, 128>}, {transform_indices = @transform_3, window_bounds = array<i64: 1, 128>}, {transform_indices = @transform_4, window_bounds = array<i64: 16, 128>}]} {
    %c0 = arith.constant 0 : index
    %c0_0 = arith.constant 0 : index
    %0 = vector.load %arg2[%c0, %c0_0] : memref<16x128xf32, #tpu.memory_space<vmem>>, vector<16x128xf32>
    %c0_1 = arith.constant 0 : index
    %c0_2 = arith.constant 0 : index
    %1 = vector.load %arg4[%c0_1, %c0_2] : memref<128x128xf32, #tpu.memory_space<vmem>>, vector<128x128xf32>
    %cst = arith.constant dense<0.000000e+00> : vector<16x128xf32>
    %2 = tpu.matmul %0, %1, %cst {dimension_numbers = #tpu.dot_dimension_numbers<[1], [0], [0], [1], [0, 0, 1, 1], [], []>} : vector<16x128xf32>, vector<128x128xf32>, vector<16x128xf32> -> vector<16x128xf32>
    %c0_3 = arith.constant 0 : index
    %c0_4 = arith.constant 0 : index
    %3 = vector.load %arg5[%c0_3, %c0_4] : memref<1x128xf32, #tpu.memory_space<vmem>>, vector<1x128xf32>
    %4 = vector.broadcast %3 : vector<1x128xf32> to vector<16x128xf32>
    %5 = arith.addf %2, %4 : vector<16x128xf32>
    %cst_5 = arith.constant 0.000000e+00 : f32
    %6 = vector.broadcast %cst_5 : f32 to vector<16x128xf32>
    %7 = arith.maximumf %5, %6 : vector<16x128xf32>
    %8 = arith.negf %5 : vector<16x128xf32>
    %9 = math.exp %8 : vector<16x128xf32>
    %cst_6 = arith.constant 1.000000e+00 : f32
    %10 = vector.broadcast %cst_6 : f32 to vector<16x128xf32>
    %11 = arith.addf %10, %9 : vector<16x128xf32>
    %12 = arith.divf %10, %11 : vector<16x128xf32>
    %c0_7 = arith.constant 0 : index
    %c0_8 = arith.constant 0 : index
    %13 = vector.load %arg3[%c0_7, %c0_8] : memref<16x128xf32, #tpu.memory_space<vmem>>, vector<16x128xf32>
    %14 = arith.subf %7, %13 : vector<16x128xf32>
    %15 = arith.mulf %12, %14 : vector<16x128xf32>
    %16 = arith.addf %13, %15 : vector<16x128xf32>
    %c0_9 = arith.constant 0 : index
    %c0_10 = arith.constant 0 : index
    %17 = vector.load %arg6[%c0_9, %c0_10] : memref<16x128xf32, #tpu.memory_space<vmem>>, vector<16x128xf32>
    tpu.vector_store %arg6[%c0_9, %c0_10], %16 {strides = array<i32>} : memref<16x128xf32, #tpu.memory_space<vmem>>, vector<16x128xf32>,
    return
  }
  func.func @transform_0(%arg0: i32, %arg1: i32) -> (i32, i32) {
    %c0_i32 = arith.constant 0 : i32
    %c0_i32_0 = arith.constant 0 : i32
    return %arg0, %c0_i32 : i32, i32
  }
  func.func @transform_1(%arg0: i32, %arg1: i32) -> (i32, i32) {
    %c0_i32 = arith.constant 0 : i32
    return %arg0, %arg1 : i32, i32
  }
  func.func @transform_2(%arg0: i32, %arg1: i32) -> (i32, i32) {
    %c0_i32 = arith.constant 0 : i32
    %c0_i32_0 = arith.constant 0 : i32
    return %c0_i32, %arg1 : i32, i32
  }
  func.func @transform_3(%arg0: i32, %arg1: i32) -> (i32, i32) {
    %c0_i32 = arith.constant 0 : i32
    %c0_i32_0 = arith.constant 0 : i32
    return %c0_i32, %arg1 : i32, i32
  }
  func.func @transform_4(%arg0: i32, %arg1: i32) -> (i32, i32) {
    %c0_i32 = arith.constant 0 : i32
    return %arg0, %arg1 : i32, i32
  }
}

</mosaic_0001>

<bundles_post_ra>
// kernel: tpu_custom_call.1
= control target key start
LH: loop header
LB: loop body
LE: loop exit
PB: predicated region body
PF: predicated region fallthrough
CT: control target
= control target key end

     0   :  { %9 = vsyncpa [#allocation3], 0  ;;  %s498_s0 = inlined_call_operand.hbm [shape: f32[16,128], index: 0, kind: input, shape index: {}]   ;;  %s499_s1 = inlined_call_operand.hbm [shape: f32[16,128], index: 1, kind: input, shape index: {}]   ;;  %s500_s2 = inlined_call_operand.hbm [shape: f32[128,128], index: 2, kind: input, shape index: {}]   ;;  %s501_s3 = inlined_call_operand.vmem [shape: f32[1,128], index: 3, kind: input, shape index: {}]   ;;  %s502_s4 = inlined_call_operand.hbm [shape: f32[16,128], index: 4, kind: output, shape index: {}]  }
   0x1   :  { %10 = vsyncpa [#allocation6], 0 }
   0x2   :  { %11 = vsyncpa [#allocation4], 0  ;;  %s397_s15 = smov [#allocation5]   ;;  %s398_s17 = smov [#allocation2]  }
   0x3   :  { %s29_s16 = sshll.u32 %s397_s15, 4  ;;  %s17_s18 = sshll.u32 %s398_s17, 4  ;;  %s30_s16 = int_to_ptr.vmem [resolvable:$true] %s29_s16  ;;  %s428_s18 = int_to_ptr.vmem [resolvable:$true] %s17_s18 }
   0x4   :  { %s303_s21 = scalar_lea.hbm %s499_s1, 256 }
   0x5   :  { %p304_p0 = scmp.ne.s32.totalorder %s499_s1, %s303_s21  ;;  %p307_p1 = scmp.lt.u32.totalorder %s303_s21, %s499_s1 }
   0x7   :  { %p309_p2 = pnand %p307_p1, %p304_p0 }
   0x9   :  { %312 = shalt.err (!%p309_p2)
}
   0xa   :  { %s313_s26 = scalar_lea.vmem %s30_s16, 256  ;;  %p318_p4 = scmp.lt.s32.totalorder %s30_s16, %s30_s16 }
   0xb   :  { %p314_p3 = scmp.ne.s32.totalorder %s30_s16, %s313_s26  ;;  %p319_p5 = scmp.lt.s32.totalorder %s313_s26, %s313_s26 }
   0xd   :  { %p320_p6 = por %p319_p5, %p318_p4 }
   0xf   :  { %p321_p7 = pnand %p320_p6, %p314_p3 }
  0x11   :  { %324 = shalt.err (!%p321_p7)
}
  0x12   :  { %s399_s27 = smov 128   ;;  %s400_s28 = smov 8  }
  0x13   :  { %35 = dma.hbm_to_vmem [thread:$0]  %s499_s1, 256, %s30_s16, [#allocation6], %s399_s27, %s399_s27, %s400_s28  }
  0x14   :  { %s325_s7 = scalar_lea.hbm %s498_s0, 256 }
  0x15   :  { %p326_p8 = scmp.ne.s32.totalorder %s498_s0, %s325_s7  ;;  %p329_p9 = scmp.lt.u32.totalorder %s325_s7, %s498_s0 }
  0x17   :  { %p331_p10 = pnand %p329_p9, %p326_p8 }
  0x19   :  { %334 = shalt.err (!%p331_p10)
}
  0x1a   :  { %s335_s12 = scalar_lea.vmem %s428_s18, 256  ;;  %p340_p12 = scmp.lt.s32.totalorder %s428_s18, %s428_s18 }
  0x1b   :  { %p336_p11 = scmp.ne.s32.totalorder %s428_s18, %s335_s12  ;;  %p341_p13 = scmp.lt.s32.totalorder %s335_s12, %s335_s12 }
  0x1d   :  { %p342_p0 = por %p341_p13, %p340_p12 }
  0x1f   :  { %p343_p1 = pnand %p342_p0, %p336_p11 }
  0x21   :  { %346 = shalt.err (!%p343_p1)
}
  0x22   :  { %23 = dma.hbm_to_vmem [thread:$0]  %s498_s0, 256, %s428_s18, [#allocation3], %s399_s27, %s399_s27, %s400_s28  }
  0x23   :  { %s401_s14 = smov [#allocation7]   ;;  %s347_s19 = scalar_lea.hbm %s500_s2, 2048 }
  0x24   :  { %s41_s15 = sshll.u32 %s401_s14, 4  ;;  %p348_p2 = scmp.ne.s32.totalorder %s500_s2, %s347_s19  ;;  %s42_s15 = int_to_ptr.vmem [resolvable:$true] %s41_s15 }
  0x25   :  { %p351_p3 = scmp.lt.u32.totalorder %s347_s19, %s500_s2 }
  0x27   :  { %p353_p4 = pnand %p351_p3, %p348_p2 }
  0x29   :  { %356 = shalt.err (!%p353_p4)
}
  0x2a   :  { %s357_s24 = scalar_lea.vmem %s42_s15, 2048  ;;  %p362_p6 = scmp.lt.s32.totalorder %s42_s15, %s42_s15 }
  0x2b   :  { %p358_p5 = scmp.ne.s32.totalorder %s42_s15, %s357_s24  ;;  %p363_p7 = scmp.lt.s32.totalorder %s357_s24, %s357_s24 }
  0x2d   :  { %p364_p8 = por %p363_p7, %p362_p6 }
  0x2f   :  { %p365_p9 = pnand %p364_p8, %p358_p5 }
  0x31   :  { %368 = shalt.err (!%p365_p9)
}
  0x32   :  { %47 = dma.hbm_to_vmem [thread:$0]  %s500_s2, 2048, %s42_s15, [#allocation6], %s399_s27, %s399_s27, %s400_s28  }
  0x33   :  { %391 = dma.done.wait [#allocation3], 256  }
  0x34   :  { %392 = vsyncadd [#allocation3], 4294967040 }
  0x35   :  { %393 = dma.done.wait [#allocation6], 2304  }
  0x36   :  { %394 = vsyncadd [#allocation6], 4294964992  ;;  %v61_v0 = vld [vmem:[#allocation7] sm:$0xff]  ;;  %v62_v1 = vld [vmem:[#allocation7 + $0x8] sm:$0xff] }
  0x37   :  { %v63_v2 = vld [vmem:[#allocation7 + $0x10] sm:$0xff]  ;;  %v257_v3 = vpack.c.bf16 %v62_v1, %v61_v0  ;;  %v64_v4 = vld [vmem:[#allocation7 + $0x18] sm:$0xff]  ;;  %v65_v6 = vld [vmem:[#allocation7 + $0x20] sm:$0xff] }
  0x38   :  { %v261_v5 = vpack.c.bf16 %v64_v4, %v63_v2  ;;  %v66_v7 = vld [vmem:[#allocation7 + $0x28] sm:$0xff]  ;;  %v59_v9 = vld [vmem:[#allocation2] sm:$0xff]  ;;  %v67_v10 = vld [vmem:[#allocation7 + $0x30] sm:$0xff] }
  0x39   :  { %258 = vmatprep.subr.bf16.mxu0 %v257_v3  ;;  %v265_v8 = vpack.c.bf16 %v66_v7, %v65_v6  ;;  %v68_v11 = vld [vmem:[#allocation7 + $0x38] sm:$0xff]  ;;  %254 = vmatprep.mubr.f32.mxu0 %v59_v9  ;;  %v69_v13 = vld [vmem:[#allocation7 + $0x40] sm:$0xff]  ;;  %v70_v14 = vld [vmem:[#allocation7 + $0x48] sm:$0xff] }
  0x3a   :  { %260 = vmatpush3.bf16.msra.mxu0 %v257_v3  ;;  %v269_v12 = vpack.c.bf16 %v68_v11, %v67_v10  ;;  %v273_v15 = vpack.c.bf16 %v70_v14, %v69_v13  ;;  %v71_v16 = vld [vmem:[#allocation7 + $0x50] sm:$0xff]  ;;  %v72_v17 = vld [vmem:[#allocation7 + $0x58] sm:$0xff]  ;;  %v73_v19 = vld [vmem:[#allocation7 + $0x60] sm:$0xff] }
  0x3b   :  { %262 = vmatprep.subr.bf16.mxu0 %v261_v5  ;;  %v277_v18 = vpack.c.bf16 %v72_v17, %v71_v16  ;;  %v74_v20 = vld [vmem:[#allocation7 + $0x68] sm:$0xff]  ;;  %v75_v22 = vld [vmem:[#allocation7 + $0x70] sm:$0xff]  ;;  %v76_v23 = vld [vmem:[#allocation7 + $0x78] sm:$0xff] }
  0x3c   :  { %v281_v21 = vpack.c.bf16 %v74_v20, %v73_v19  ;;  %v285_v24 = vpack.c.bf16 %v76_v23, %v75_v22  ;;  %v60_v25 = vld [vmem:[#allocation2 + $0x8] sm:$0xff]  ;;  %v201_v26 = vld [vmem:[%s501_s3] ss:$0 sm:$0xff]  ;;  %v174_v38 = vld [vmem:[#allocation5 + $0x8] sm:$0xff]  ;;  %s402_s3 = smov [#allocation8]  }
  0x3d   :  { %v173_v40 = vld [vmem:[#allocation5] sm:$0xff]  ;;  %s188_s26 = sshll.u32 %s402_s3, 4  ;;  %s189_s26 = int_to_ptr.vmem [resolvable:$true] %s188_s26 }
  0x3e   :  { %264 = vmatpush3.bf16.msra.mxu0 %v261_v5  ;;  %s369_s29 = scalar_lea.vmem %s189_s26, 256  ;;  %p374_p11 = scmp.lt.s32.totalorder %s189_s26, %s189_s26 }
  0x3f   :  { %266 = vmatprep.subr.bf16.mxu0 %v265_v8  ;;  %p370_p10 = scmp.ne.s32.totalorder %s189_s26, %s369_s29  ;;  %p375_p12 = scmp.lt.s32.totalorder %s369_s29, %s369_s29 }
  0x41   :  { %p376_p13 = por %p375_p12, %p374_p11 }
  0x42   :  { %268 = vmatpush3.bf16.msra.mxu0 %v265_v8 }
  0x43   :  { %270 = vmatprep.subr.bf16.mxu0 %v269_v12  ;;  %p377_p0 = pnand %p376_p13, %p370_p10 }
  0x46   :  { %272 = vmatpush3.bf16.msra.mxu0 %v269_v12 }
  0x47   :  { %274 = vmatprep.subr.bf16.mxu0 %v273_v15 }
  0x4a   :  { %276 = vmatpush3.bf16.msra.mxu0 %v273_v15 }
  0x4b   :  { %278 = vmatprep.subr.bf16.mxu0 %v277_v18 }
  0x4e   :  { %280 = vmatpush3.bf16.msra.mxu0 %v277_v18 }
  0x4f   :  { %282 = vmatprep.subr.bf16.mxu0 %v281_v21 }
  0x52   :  { %284 = vmatpush3.bf16.msra.mxu0 %v281_v21 }
  0x53   :  { %286 = vmatprep.subr.bf16.mxu0 %v285_v24 }
  0x56   :  { %288 = vmatpush3.bf16.msra.mxu0 %v285_v24 }
  0x59   :  { %255 = vmatmul.mubr.f32.vlgmr.msra.gmra.mrb[0].mxu0 %v60_v25 }
 0x12c   :  { %v256_v27 = vpop.f32.mrb[0].mxu0 }
 0x12d   :  { %v156_v28 = vadd.f32 %v256_v27, %v201_v26  ;;  %v150_v29 = vpop.f32.mrb[1].mxu0 }
 0x12e   :  { %v151_v30 = vadd.f32 %v201_v26, %v150_v29 }
 0x12f   :  { %v203_v31 = vmul.f32 -1.442695, %v156_v28  ;;  %v160_v37 = vmax.f32 %v156_v28, 0.0 }
 0x130   :  { %v202_v32 = vmul.f32 -1.442695, %v151_v30  ;;  %v159_v39 = vmax.f32 %v151_v30, 0.0 }
 0x131   :  { %295 = vpow2.f32 %v203_v31  ;;  %v176_v41 = vsub.f32 %v160_v37, %v174_v38 }
 0x132   :  { %297 = vpow2.f32 %v202_v32  ;;  %v175_v43 = vsub.f32 %v159_v39, %v173_v40 }
 0x13b   :  { %v296_v33 = vpop.eup %295 }
 0x13c   :  { %v298_v34 = vpop.eup %297  ;;  %v168_v35 = vadd.f32 1.0, %v296_v33 }
 0x13d   :  { %v167_v36 = vadd.f32 1.0, %v298_v34 }
 0x13e   :  { %299 = vrcp.f32 %v168_v35 }
 0x13f   :  { %301 = vrcp.f32 %v167_v36 }
 0x148   :  { %v300_v42 = vpop.eup %299 }
 0x149   :  { %v302_v44 = vpop.eup %301  ;;  %v178_v45 = vmul.f32 %v300_v42, %v176_v41 }
 0x14a   :  { %v177_v46 = vmul.f32 %v302_v44, %v175_v43 }
 0x14b   :  { %v180_v47 = vadd.f32 %v178_v45, %v174_v38 }
 0x14c   :  { %v179_v48 = vadd.f32 %v177_v46, %v173_v40 }
 0x14d   :  { %182 = vst [vmem:[#allocation8 + $0x8] sm:$0xff] %v180_v47 }
 0x14e   :  { %181 = vst [vmem:[#allocation8] sm:$0xff] %v179_v48 }
 0x14f   :  { %380 = shalt.err (!%p377_p0)
}
 0x150   :  { %s381_s6 = scalar_lea.hbm %s502_s4, 256 }
 0x151   :  { %p382_p1 = scmp.ne.s32.totalorder %s502_s4, %s381_s6  ;;  %p385_p2 = scmp.lt.u32.totalorder %s381_s6, %s502_s4 }
 0x153   :  { %p387_p3 = pnand %p385_p2, %p382_p1 }
 0x155   :  { %390 = shalt.err (!%p387_p3)
}
 0x156   :  { %194 = dma.vmem_to_hbm [thread:$0]  %s189_s26, 256, %s502_s4, [#allocation4], %s399_s27, %s399_s27, %s400_s28  }
 0x157   :  { %395 = dma.done.wait [#allocation4], 256  }
 0x158   :  { %396 = vsyncadd [#allocation4], 4294967040 }
 0x159   :  { %198 = vsyncpa [#allocation3], 1 }
 0x15a   :  { %199 = vsyncpa [#allocation6], 1 }
 0x15b   :  { %200 = vsyncpa [#allocation4], 1 }

</bundles_post_ra>
